<compile_context>
chip_gen: v7x
topology: tpu7x:2x2x1
jax: 0.10.0
libtpu: 0.0.40
codegen_flags: <defaults>
</compile_context>

<pallas_src>
import jax
import jax.numpy as jnp
from jax import lax
from jax.experimental import pallas as pl
from jax.experimental.pallas import tpu as pltpu

LANES = 128
MAX_TILE_ROWS = 2048   # (2048, 128) f32 tile = 1 MiB per input per pipeline buffer


def _detect_tc_count():
    """Best-effort TensorCore-per-device count (v7x megacore -> 2, else 1)."""
    try:
        info = pltpu.get_tpu_info()
        for name in ("tensorcores_per_chip", "tensor_cores_per_chip",
                     "num_tensorcores", "num_cores", "core_count"):
            val = getattr(info, name, None)
            if isinstance(val, int) and 1 <= val <= 8:
                return val
    except Exception:
        pass
    try:
        val = getattr(jax.devices()[0], "num_cores", None)
        if isinstance(val, int) and 1 <= val <= 8:
            return val
    except Exception:
        pass
    return 1  # safe default: single-TC (v5e / v6e) behavior


def _make_kernel(num_parts, tiles_per_part, tile_rows, lane_w, valid_rows,
                 needs_row_mask):
    """Build the kernel with static tiling constants closed over."""

    def kernel(l_ref, t_ref, m_ref, sum_ref, cnt_ref):
        if num_parts > 1:
            p = pl.program_id(0)          # core/partition index ("parallel")
            i = pl.program_id(1)          # row-tile index within partition
            g = p * tiles_per_part + i    # unclamped global tile id
        else:
            i = pl.program_id(0)
            g = i

        @pl.when(i == 0)
        def _init():
            sum_ref[...] = jnp.zeros_like(sum_ref)
            cnt_ref[...] = jnp.zeros_like(cnt_ref)

        # Upcast inside the kernel; inputs stream in their native (narrow) dtypes.
        diff = l_ref[...].astype(jnp.float32) - t_ref[...].astype(jnp.float32)
        sq = diff * diff
        fg = m_ref[...] != 0              # torch mask.bool(): any nonzero is foreground

        def accumulate(pred):
            # Per-step partial reduce over sublanes (XLU) into (1, lane_w)
            # output accumulators resident in VMEM across the reduction axis.
            sum_ref[...] += jnp.sum(jnp.where(pred, sq, 0.0), axis=0, keepdims=True)
            cnt_ref[...] += jnp.sum(pred.astype(jnp.float32), axis=0, keepdims=True)

        if needs_row_mask:
            tile_end = (g + 1) * tile_rows

            @pl.when(tile_end <= valid_rows)        # interior tile: no masking cost
            def _interior():
                accumulate(fg)

            @pl.when(tile_end > valid_rows)         # ragged last / duplicated tile
            def _edge():
                row_ids = lax.broadcasted_iota(jnp.int32, (tile_rows, lane_w), 0)
                in_bounds = (g * tile_rows + row_ids) < valid_rows
                accumulate(jnp.logical_and(fg, in_bounds))
        else:
            accumulate(fg)

    return kernel


def masked_mse_loss(logits, targets, mask):
    """logits, targets, mask: (N, 1, H, W). Returns scalar float32 loss."""
    assert logits.shape == targets.shape == mask.shape
    total = int(logits.size)
    if total == 0:
        return jnp.float32(0.0)

    # Stream the mask in a narrow dtype; avoid 1-bit layouts.
    if mask.dtype == jnp.bool_:
        mask = mask.astype(jnp.uint8)

    # Free contiguous reshape into a lane-dense 2-D slab (no jnp.pad copy pass).
    if total % LANES == 0:
        lane_w = LANES
    else:
        lane_w = int(logits.shape[-1])
    rows = total // lane_w

    def as2d(x):
        return jnp.reshape(x, (rows, lane_w))

    l2, t2, m2 = as2d(logits), as2d(targets), as2d(mask)

    tile_rows = min(MAX_TILE_ROWS, rows)
    row_tiles = pl.cdiv(rows, tile_rows)
    num_parts = max(1, min(_detect_tc_count(), 2, row_tiles))
    tiles_per_part = pl.cdiv(row_tiles, num_parts)
    needs_row_mask = (rows % tile_rows != 0) or (row_tiles % num_parts != 0)
    last_tile = row_tiles - 1

    if num_parts > 1:
        grid = (num_parts, tiles_per_part)

        def in_map(p, i):
            # Clamp so duplicated tiles of an uneven core split never DMA out of
            # range; the in-kernel row mask (unclamped g) zeroes their contribution.
            return (jnp.minimum(p * tiles_per_part + i, last_tile), 0)

        out_map = lambda p, i: (p, 0, 0)
        dim_sem = ("parallel", "arbitrary")
        # TODO(synk): on v7x, if profiling shows one TC idle, switch the leading
        # axis semantics to pltpu.CORE_PARALLEL to guarantee the 2-TC split.
    else:
        grid = (row_tiles,)
        in_map = lambda i: (i, 0)
        out_map = lambda i: (0, 0, 0)
        dim_sem = ("arbitrary",)

    in_spec = pl.BlockSpec((tile_rows, lane_w), in_map)
    out_spec = pl.BlockSpec((None, 1, lane_w), out_map)

    kernel = _make_kernel(num_parts, tiles_per_part, tile_rows, lane_w, rows,
                          needs_row_mask)

    sums, cnts = pl.pallas_call(
        kernel,
        out_shape=(
            jax.ShapeDtypeStruct((num_parts, 1, lane_w), jnp.float32),
            jax.ShapeDtypeStruct((num_parts, 1, lane_w), jnp.float32),
        ),
        grid_spec=pltpu.PrefetchScalarGridSpec(
            num_scalar_prefetch=0,
            grid=grid,
            in_specs=[in_spec, in_spec, in_spec],
            out_specs=[out_spec, out_spec],
        ),
        compiler_params=pltpu.CompilerParams(
            dimension_semantics=dim_sem,
            vmem_limit_bytes=32 * 1024 * 1024,
        ),
    )(l2, t2, m2)

    s = jnp.sum(sums)
    # Per-lane counts are exact in f32 (each bounded by `rows`); casting to int32
    # makes the final 128*num_parts-way count sum exact as well.
    c = jnp.sum(cnts.astype(jnp.int32))
    # torch: returns 0.0 when no foreground pixels exist.
    # NOTE: error sums accumulate in f32 (same as torch f32 reduction).
    return jnp.where(c > 0, s / jnp.maximum(c, 1).astype(jnp.float32),
                     jnp.float32(0.0))


def _reference(logits, targets, mask):
    mse = (logits.astype(jnp.float32) - targets.astype(jnp.float32)) ** 2
    fg = mask != 0
    return jnp.where(
        jnp.any(fg),
        jnp.sum(jnp.where(fg, mse, 0.0)) / jnp.maximum(jnp.sum(fg), 1),
        0.0,
    )


if __name__ == "__main__":
    key = jax.random.PRNGKey(0)

    # (shape, logits/targets dtype, mask dtype)
    cases = [
        ((2, 1, 16, 16), jnp.float32, jnp.float32),     # module-typical small case
        ((3, 1, 37, 41), jnp.float32, jnp.float32),     # total % 128 != 0 -> W-lane path (no pad)
        ((4, 1, 160, 256), jnp.float32, jnp.float32),   # larger single-tile slab
        ((2, 1, 64, 128), jnp.bfloat16, jnp.uint8),     # native narrow-dtype streaming
        ((1, 1, 2100, 128), jnp.float32, jnp.float32),  # multi-tile, ragged last tile
    ]

    for shape, xdt, mdt in cases:
        key, k1, k2, k3 = jax.random.split(key, 4)
        logits = jax.random.normal(k1, shape, dtype=jnp.float32).astype(xdt)
        targets = jax.random.bernoulli(k2, 0.5, shape).astype(xdt)
        mask = jax.random.bernoulli(k3, 0.3, shape).astype(mdt)

        loss = jax.block_until_ready(masked_mse_loss(logits, targets, mask))
        ref = _reference(logits, targets, mask)
        assert jnp.allclose(loss, ref, rtol=1e-5, atol=1e-6), (shape, loss, ref)

    # All-background mask -> torch returns 0.0.
    shape = (2, 1, 16, 16)
    key, k1, k2 = jax.random.split(key, 3)
    logits = jax.random.normal(k1, shape, dtype=jnp.float32)
    targets = jax.random.bernoulli(k2, 0.5, shape).astype(jnp.float32)
    mask = jnp.zeros(shape, dtype=jnp.float32)
    loss = jax.block_until_ready(masked_mse_loss(logits, targets, mask))
    assert jnp.allclose(loss, 0.0), loss

    print("KERNEL_OK")
</pallas_src>

<mosaic_0001>
module attributes {stable_mosaic.version = 11 : i64} {
  func.func @kernel(%arg0: i32, %arg1: memref<4x128xf32, #tpu.memory_space<vmem>>, %arg2: memref<4x128xf32, #tpu.memory_space<vmem>>, %arg3: memref<4x128xf32, #tpu.memory_space<vmem>>, %arg4: memref<1x1x128xf32, #tpu.memory_space<vmem>>, %arg5: memref<1x1x128xf32, #tpu.memory_space<vmem>>) attributes {dimension_semantics = [#tpu.dimension_semantics<arbitrary>], iteration_bounds = array<i64: 1>, scalar_prefetch = 0 : i64, scratch_operands = 0 : i64, tpu.core_type = #tpu.core_type<tc>, window_params = [{transform_indices = @transform_0, window_bounds = array<i64: 4, 128>}, {transform_indices = @transform_1, window_bounds = array<i64: 4, 128>}, {transform_indices = @transform_2, window_bounds = array<i64: 4, 128>}, {pipeline_mode = #tpu.pipeline_mode<synchronous>, transform_indices = @transform_3, window_bounds = array<i64: 1, 1, 128>}, {pipeline_mode = #tpu.pipeline_mode<synchronous>, transform_indices = @transform_4, window_bounds = array<i64: 1, 1, 128>}]} {
    %c0_i32 = arith.constant 0 : i32
    %0 = arith.cmpi eq, %arg0, %c0_i32 : i32
    %1 = arith.extui %0 : i1 to i32
    %c0_i32_0 = arith.constant 0 : i32
    %2 = arith.cmpi ne, %1, %c0_i32_0 : i32
    scf.if %2 {
      %cst_21 = arith.constant 0.000000e+00 : f32
      %30 = vector.broadcast %cst_21 : f32 to vector<1x128xf32>
      %c0_22 = arith.constant 0 : index
      %c0_23 = arith.constant 0 : index
      %c0_24 = arith.constant 0 : index
      %31 = vector.load %arg4[%c0_22, %c0_23, %c0_24] : memref<1x1x128xf32, #tpu.memory_space<vmem>>, vector<1x1x128xf32>
      %32 = vector.shape_cast %31 : vector<1x1x128xf32> to vector<1x128xf32>
      %33 = vector.shape_cast %30 : vector<1x128xf32> to vector<1x1x128xf32>
      tpu.vector_store %arg4[%c0_22, %c0_23, %c0_24], %33 {strides = array<i32>} : memref<1x1x128xf32, #tpu.memory_space<vmem>>, vector<1x1x128xf32>,
      %cst_25 = arith.constant 0.000000e+00 : f32
      %34 = vector.broadcast %cst_25 : f32 to vector<1x128xf32>
      %c0_26 = arith.constant 0 : index
      %c0_27 = arith.constant 0 : index
      %c0_28 = arith.constant 0 : index
      %35 = vector.load %arg5[%c0_26, %c0_27, %c0_28] : memref<1x1x128xf32, #tpu.memory_space<vmem>>, vector<1x1x128xf32>
      %36 = vector.shape_cast %35 : vector<1x1x128xf32> to vector<1x128xf32>
      %37 = vector.shape_cast %34 : vector<1x128xf32> to vector<1x1x128xf32>
      tpu.vector_store %arg5[%c0_26, %c0_27, %c0_28], %37 {strides = array<i32>} : memref<1x1x128xf32, #tpu.memory_space<vmem>>, vector<1x1x128xf32>,
    } else {
    }
    %c0 = arith.constant 0 : index
    %c0_1 = arith.constant 0 : index
    %3 = vector.load %arg1[%c0, %c0_1] : memref<4x128xf32, #tpu.memory_space<vmem>>, vector<4x128xf32>
    %c0_2 = arith.constant 0 : index
    %c0_3 = arith.constant 0 : index
    %4 = vector.load %arg2[%c0_2, %c0_3] : memref<4x128xf32, #tpu.memory_space<vmem>>, vector<4x128xf32>
    %5 = arith.subf %3, %4 : vector<4x128xf32>
    %6 = arith.mulf %5, %5 : vector<4x128xf32>
    %c0_4 = arith.constant 0 : index
    %c0_5 = arith.constant 0 : index
    %7 = vector.load %arg3[%c0_4, %c0_5] : memref<4x128xf32, #tpu.memory_space<vmem>>, vector<4x128xf32>
    %cst = arith.constant 0.000000e+00 : f32
    %8 = vector.broadcast %cst : f32 to vector<4x128xf32>
    %9 = arith.cmpf one, %7, %8 : vector<4x128xf32>
    %c0_6 = arith.constant 0 : index
    %c0_7 = arith.constant 0 : index
    %c0_8 = arith.constant 0 : index
    %10 = vector.load %arg4[%c0_6, %c0_7, %c0_8] : memref<1x1x128xf32, #tpu.memory_space<vmem>>, vector<1x1x128xf32>
    %11 = vector.shape_cast %10 : vector<1x1x128xf32> to vector<1x128xf32>
    %cst_9 = arith.constant 0.000000e+00 : f32
    %12 = vector.broadcast %cst_9 : f32 to vector<4x128xf32>
    %13 = arith.select %9, %6, %12 : vector<4x128xi1>, vector<4x128xf32>
    %cst_10 = arith.constant dense<0.000000e+00> : vector<128xf32>
    %14 = vector.multi_reduction <add>, %13, %cst_10 [0] : vector<4x128xf32> to vector<128xf32>
    %15 = vector.shape_cast %14 : vector<128xf32> to vector<1x128xf32>
    %16 = arith.addf %11, %15 : vector<1x128xf32>
    %c0_11 = arith.constant 0 : index
    %c0_12 = arith.constant 0 : index
    %c0_13 = arith.constant 0 : index
    %17 = vector.load %arg4[%c0_11, %c0_12, %c0_13] : memref<1x1x128xf32, #tpu.memory_space<vmem>>, vector<1x1x128xf32>
    %18 = vector.shape_cast %17 : vector<1x1x128xf32> to vector<1x128xf32>
    %19 = vector.shape_cast %16 : vector<1x128xf32> to vector<1x1x128xf32>
    tpu.vector_store %arg4[%c0_11, %c0_12, %c0_13], %19 {strides = array<i32>} : memref<1x1x128xf32, #tpu.memory_space<vmem>>, vector<1x1x128xf32>,
    %c0_14 = arith.constant 0 : index
    %c0_15 = arith.constant 0 : index
    %c0_16 = arith.constant 0 : index
    %20 = vector.load %arg5[%c0_14, %c0_15, %c0_16] : memref<1x1x128xf32, #tpu.memory_space<vmem>>, vector<1x1x128xf32>
    %21 = vector.shape_cast %20 : vector<1x1x128xf32> to vector<1x128xf32>
    %22 = arith.extui %9 : vector<4x128xi1> to vector<4x128xi32>
    %23 = arith.sitofp %22 : vector<4x128xi32> to vector<4x128xf32>
    %cst_17 = arith.constant dense<0.000000e+00> : vector<128xf32>
    %24 = vector.multi_reduction <add>, %23, %cst_17 [0] : vector<4x128xf32> to vector<128xf32>
    %25 = vector.shape_cast %24 : vector<128xf32> to vector<1x128xf32>
    %26 = arith.addf %21, %25 : vector<1x128xf32>
    %c0_18 = arith.constant 0 : index
    %c0_19 = arith.constant 0 : index
    %c0_20 = arith.constant 0 : index
    %27 = vector.load %arg5[%c0_18, %c0_19, %c0_20] : memref<1x1x128xf32, #tpu.memory_space<vmem>>, vector<1x1x128xf32>
    %28 = vector.shape_cast %27 : vector<1x1x128xf32> to vector<1x128xf32>
    %29 = vector.shape_cast %26 : vector<1x128xf32> to vector<1x1x128xf32>
    tpu.vector_store %arg5[%c0_18, %c0_19, %c0_20], %29 {strides = array<i32>} : memref<1x1x128xf32, #tpu.memory_space<vmem>>, vector<1x1x128xf32>,
    return
  }
  func.func @transform_0(%arg0: i32) -> (i32, i32) {
    %c0_i32 = arith.constant 0 : i32
    %c0_i32_0 = arith.constant 0 : i32
    return %arg0, %c0_i32 : i32, i32
  }
  func.func @transform_1(%arg0: i32) -> (i32, i32) {
    %c0_i32 = arith.constant 0 : i32
    %c0_i32_0 = arith.constant 0 : i32
    return %arg0, %c0_i32 : i32, i32
  }
  func.func @transform_2(%arg0: i32) -> (i32, i32) {
    %c0_i32 = arith.constant 0 : i32
    %c0_i32_0 = arith.constant 0 : i32
    return %arg0, %c0_i32 : i32, i32
  }
  func.func @transform_3(%arg0: i32) -> (i32, i32, i32) {
    %c0_i32 = arith.constant 0 : i32
    %c0_i32_0 = arith.constant 0 : i32
    %c0_i32_1 = arith.constant 0 : i32
    %c0_i32_2 = arith.constant 0 : i32
    return %c0_i32, %c0_i32_0, %c0_i32_1 : i32, i32, i32
  }
  func.func @transform_4(%arg0: i32) -> (i32, i32, i32) {
    %c0_i32 = arith.constant 0 : i32
    %c0_i32_0 = arith.constant 0 : i32
    %c0_i32_1 = arith.constant 0 : i32
    %c0_i32_2 = arith.constant 0 : i32
    return %c0_i32, %c0_i32_0, %c0_i32_1 : i32, i32, i32
  }
}

</mosaic_0001>

<bundles_post_ra>
// kernel: tpu_custom_call.1
= control target key start
LH: loop header
LB: loop body
LE: loop exit
PB: predicated region body
PF: predicated region fallthrough
CT: control target
= control target key end

     0   :  { %10 = vsyncpa [#allocation3], 0  ;;  %s299_s0 = inlined_call_operand.hbm [shape: f32[4,128], index: 0, kind: input, shape index: {}]   ;;  %s300_s1 = inlined_call_operand.hbm [shape: f32[4,128], index: 1, kind: input, shape index: {}]   ;;  %s301_s2 = inlined_call_operand.vmem [shape: f32[4,128], index: 2, kind: input, shape index: {}]   ;;  %s302_s3 = inlined_call_operand.hbm [shape: f32[1,1,128], index: 3, kind: output, shape index: {0}]   ;;  %s303_s4 = inlined_call_operand.hbm [shape: f32[1,1,128], index: 4, kind: output, shape index: {1}]  }
   0x1   :  { %11 = vsyncpa [#allocation6], 0 }
   0x2   :  { %12 = vsyncpa [#allocation4], 0 }
   0x3   :  { %13 = vsyncpa [#allocation9], 0  ;;  %s210_s15 = smov [#allocation2]   ;;  %s211_s17 = smov [#allocation5]  }
   0x4   :  { %s20_s16 = sshll.u32 %s210_s15, 4  ;;  %s30_s18 = sshll.u32 %s211_s17, 4  ;;  %s21_s16 = int_to_ptr.vmem [resolvable:$true] %s20_s16  ;;  %s31_s18 = int_to_ptr.vmem [resolvable:$true] %s30_s18 }
   0x5   :  { %s114_s21 = scalar_lea.hbm %s299_s0, 64 }
   0x6   :  { %p115_p0 = scmp.ne.s32.totalorder %s299_s0, %s114_s21  ;;  %p118_p1 = scmp.lt.u32.totalorder %s114_s21, %s299_s0 }
   0x8   :  { %p120_p2 = pnand %p118_p1, %p115_p0 }
   0xa   :  { %123 = shalt.err (!%p120_p2)
}
   0xb   :  { %s124_s26 = scalar_lea.vmem %s21_s16, 64  ;;  %p129_p4 = scmp.lt.s32.totalorder %s21_s16, %s21_s16 }
   0xc   :  { %p125_p3 = scmp.ne.s32.totalorder %s21_s16, %s124_s26  ;;  %p130_p5 = scmp.lt.s32.totalorder %s124_s26, %s124_s26 }
   0xe   :  { %p131_p6 = por %p130_p5, %p129_p4 }
  0x10   :  { %p132_p7 = pnand %p131_p6, %p125_p3 }
  0x12   :  { %135 = shalt.err (!%p132_p7)
}
  0x13   :  { %23 = dma.hbm_to_vmem [thread:$0]  %s299_s0, 64, %s21_s16, [#allocation3]  }
  0x14   :  { %s136_s5 = scalar_lea.hbm %s300_s1, 64 }
  0x15   :  { %p137_p8 = scmp.ne.s32.totalorder %s300_s1, %s136_s5  ;;  %p140_p9 = scmp.lt.u32.totalorder %s136_s5, %s300_s1 }
  0x17   :  { %p142_p10 = pnand %p140_p9, %p137_p8 }
  0x19   :  { %145 = shalt.err (!%p142_p10)
}
  0x1a   :  { %s146_s10 = scalar_lea.vmem %s31_s18, 64  ;;  %p151_p12 = scmp.lt.s32.totalorder %s31_s18, %s31_s18 }
  0x1b   :  { %p147_p11 = scmp.ne.s32.totalorder %s31_s18, %s146_s10  ;;  %p152_p13 = scmp.lt.s32.totalorder %s146_s10, %s146_s10 }
  0x1d   :  { %p153_p0 = por %p152_p13, %p151_p12 }
  0x1f   :  { %p154_p1 = pnand %p153_p0, %p147_p11 }
  0x21   :  { %157 = shalt.err (!%p154_p1)
}
  0x22   :  { %33 = dma.hbm_to_vmem [thread:$0]  %s300_s1, 64, %s31_s18, [#allocation6]  }
  0x23   :  { %202 = dma.done.wait [#allocation3], 64  }
  0x24   :  { %203 = vsyncadd [#allocation3], 4294967232 }
  0x25   :  { %204 = dma.done.wait [#allocation6], 64  }
  0x26   :  { %205 = vsyncadd [#allocation6], 4294967232  ;;  %v212_v0 = vmov 0.0   ;;  %vm56_vm0 = vcmask 1043456   ;;  %v48_v1 = vld [vmem:[#allocation2] sm:$0xf] }
  0x27   :  { %46 = vst [vmem:[#allocation7] sm:$0x1] %v212_v0  ;;  %47 = vst [vmem:[#allocation8] sm:$0x1] %v212_v0  ;;  %v49_v2 = vld [vmem:[#allocation5] sm:$0xf] }
  0x28   :  { %v52_v3 = vld [vmem:[%s301_s2] sm:$0xf]  ;;  %v50_v4 = vsub.f32 %v48_v1, %v49_v2  ;;  %s213_s1 = smov [#allocation8]   ;;  %s214_s2 = smov [#allocation7]  }
  0x29   :  { %vm53_vm1 = vcmp.ne.f32.partialorder %v52_v3, 0.0  ;;  %s94_s14 = sshll.u32 %s213_s1, 4  ;;  %s84_s15 = sshll.u32 %s214_s2, 4  ;;  %s95_s14 = int_to_ptr.vmem [resolvable:$true] %s94_s14  ;;  %s267_s15 = int_to_ptr.vmem [resolvable:$true] %s84_s15 }
  0x2a   :  { %v108_v5 = vsel %vm53_vm1, 1.0, %v212_v0  ;;  %v51_v6 = vmul.f32 %v50_v4, %v50_v4  ;;  %s158_s16 = scalar_lea.vmem %s95_s14, 16  ;;  %s162_s17 = scalar_lea.vmem %s95_s14, 32 }
  0x2b   :  { %v69_v7 = vsel %vm56_vm0, %v108_v5, 0.0  ;;  %p159_p2 = scmp.ne.s32.totalorder %s95_s14, %s158_s16  ;;  %p163_p3 = scmp.lt.s32.totalorder %s95_s14, %s95_s14 }
  0x2c   :  { %v70_v8 = vrot.slane %v69_v7, 4  ;;  %v55_v9 = vsel %vm53_vm1, %v51_v6, 0.0  ;;  %p164_p4 = scmp.lt.s32.totalorder %s162_s17, %s158_s16 }
  0x2d   :  { %v57_v10 = vsel %vm56_vm0, %v55_v9, 0.0 }
  0x2e   :  { %v71_v11 = vadd.f32 %v70_v8, %v69_v7  ;;  %v58_v12 = vrot.slane %v57_v10, 4  ;;  %v66_v19 = vld [vmem:[#allocation8] sm:$0x1]  ;;  %v54_v22 = vld [vmem:[#allocation7] sm:$0x1]  ;;  %p165_p5 = por %p164_p4, %p163_p3 }
  0x30   :  { %v72_v13 = vrot.slane %v71_v11, 2  ;;  %v59_v14 = vadd.f32 %v58_v12, %v57_v10  ;;  %p166_p6 = pnand %p165_p5, %p159_p2 }
  0x32   :  { %v73_v15 = vadd.f32 %v72_v13, %v71_v11  ;;  %v60_v16 = vrot.slane %v59_v14, 2 }
  0x34   :  { %v74_v17 = vrot.slane %v73_v15, 1  ;;  %v61_v18 = vadd.f32 %v60_v16, %v59_v14 }
  0x36   :  { %v75_v20 = vadd.f32 %v74_v17, %v73_v15  ;;  %v62_v21 = vrot.slane %v61_v18, 1 }
  0x38   :  { %v76_v23 = vadd.f32 %v75_v20, %v66_v19  ;;  %v63_v24 = vadd.f32 %v62_v21, %v61_v18 }
  0x3a   :  { %77 = vst [vmem:[#allocation8] sm:$0x1] %v76_v23  ;;  %v64_v25 = vadd.f32 %v63_v24, %v54_v22 }
  0x3b   :  { %169 = shalt.err (!%p166_p6)
}
  0x3c   :  { %s170_s20 = scalar_lea.hbm %s303_s4, 16 }
  0x3d   :  { %p171_p7 = scmp.ne.s32.totalorder %s303_s4, %s170_s20  ;;  %p174_p8 = scmp.lt.u32.totalorder %s170_s20, %s303_s4 }
  0x3f   :  { %p176_p9 = pnand %p174_p8, %p171_p7 }
  0x41   :  { %179 = shalt.err (!%p176_p9)
}
  0x42   :  { %97 = dma.vmem_to_hbm [thread:$0]  %s95_s14, 16, %s303_s4, [#allocation9]   ;;  %65 = vst [vmem:[#allocation7] sm:$0x1] %v64_v25 }
  0x43   :  { %s180_s27 = scalar_lea.vmem %s267_s15, 16  ;;  %s184_s28 = scalar_lea.vmem %s267_s15, 32 }
  0x44   :  { %p181_p10 = scmp.ne.s32.totalorder %s267_s15, %s180_s27  ;;  %p185_p11 = scmp.lt.s32.totalorder %s267_s15, %s267_s15 }
  0x45   :  { %p186_p12 = scmp.lt.s32.totalorder %s184_s28, %s180_s27 }
  0x47   :  { %p187_p13 = por %p186_p12, %p185_p11 }
  0x49   :  { %p188_p0 = pnand %p187_p13, %p181_p10 }
  0x4b   :  { %191 = shalt.err (!%p188_p0)
}
  0x4c   :  { %s192_s5 = scalar_lea.hbm %s302_s3, 16 }
  0x4d   :  { %p193_p1 = scmp.ne.s32.totalorder %s302_s3, %s192_s5  ;;  %p196_p2 = scmp.lt.u32.totalorder %s192_s5, %s302_s3 }
  0x4f   :  { %p198_p3 = pnand %p196_p2, %p193_p1 }
  0x51   :  { %201 = shalt.err (!%p198_p3)
}
  0x52   :  { %87 = dma.vmem_to_hbm [thread:$0]  %s267_s15, 16, %s302_s3, [#allocation4]  }
  0x53   :  { %206 = dma.done.wait [#allocation4], 16  }
  0x54   :  { %207 = vsyncadd [#allocation4], 4294967280 }
  0x55   :  { %208 = dma.done.wait [#allocation9], 16  }
  0x56   :  { %209 = vsyncadd [#allocation9], 4294967280 }
  0x57   :  { %104 = vsyncpa [#allocation3], 1 }
  0x58   :  { %105 = vsyncpa [#allocation6], 1 }
  0x59   :  { %106 = vsyncpa [#allocation4], 1 }
  0x5a   :  { %107 = vsyncpa [#allocation9], 1 }

</bundles_post_ra>
